<compile_context>
chip_gen: v6e
topology: v6e:2x2x1
jax: 0.10.0
libtpu: 0.0.40
codegen_flags: <defaults>
</compile_context>

<pallas_src>
import numpy as np
import jax
import jax.numpy as jnp
from jax.experimental import pallas as pl
from jax.experimental.pallas import tpu as pltpu

KSIZE = 9
SIGMA = 10.0
PAD = KSIZE // 2          # 4-pixel "same"-conv halo on each side
HZ = 8                    # sublane-aligned zero-halo rows in the H-pass scratch


def gaussian_taps_1d(size=KSIZE, sigma=SIGMA):
    """Normalized 1-D Gaussian; outer(g, g) == the torch 2-D gaussian_kernel."""
    ax = np.linspace(-(size - 1) / 2.0, (size - 1) / 2.0, size)
    g = np.exp(-0.5 * ax ** 2 / sigma ** 2)
    return g / g.sum()


def gaussian_kernel_np(size=KSIZE, sigma=SIGMA):
    """Same math as the torch gaussian_kernel (d=2) — used only by the reference."""
    ax = np.linspace(-(size - 1) / 2.0, (size - 1) / 2.0, size)
    xx, yy = np.meshgrid(ax, ax, indexing="ij")
    k = np.exp(-0.5 * (xx ** 2 + yy ** 2) / (sigma ** 2))
    return k / k.sum()


def _make_body(nb, H, W, taps_scaled):
    # taps_scaled = 9 * normalized 1-D gaussian, so the product of the two
    # separable passes already carries the x81 factor from the torch forward.
    tap = [np.float32(t) for t in taps_scaled]
    Hp = H + 2 * HZ

    def body(img_ref, mask_ref, out_ref, acc_hp_ref, cnt_hp_ref):
        img = img_ref[...]          # (nb, H, W) float32
        msk = mask_ref[...]         # (nb, H, W) float32

        # ---- in-kernel zero halo along W (lane axis); no HBM pad traffic ----
        zl = jnp.zeros((nb, H, PAD), jnp.float32)
        img_wp = jnp.concatenate([zl, img, zl], axis=-1)   # (nb, H, W + 8)
        msk_wp = jnp.concatenate([zl, msk, zl], axis=-1)

        # ---- gaussian pass 1 (W): symmetric tap pairing -> 5 muls, 8 adds ----
        acc_w = tap[PAD] * img_wp[:, :, PAD:PAD + W]
        for d in range(1, PAD + 1):
            acc_w = acc_w + tap[PAD + d] * (
                img_wp[:, :, PAD - d:PAD - d + W] + img_wp[:, :, PAD + d:PAD + d + W])

        # ---- count pass 1 (W): log-doubling sliding-window sum of 9 (4 adds) ----
        w2 = msk_wp[:, :, :-1] + msk_wp[:, :, 1:]     # m[i] + m[i+1]
        w4 = w2[:, :, :-2] + w2[:, :, 2:]             # sum m[i..i+3]
        w8 = w4[:, :, :-4] + w4[:, :, 4:]             # sum m[i..i+7]
        cnt_w = w8[:, :, :W] + msk_wp[:, :, 2 * PAD:2 * PAD + W]

        # ---- write W-pass results into pre-padded VMEM scratch (no concat) ----
        zrows = jnp.zeros((nb, HZ, W), jnp.float32)
        acc_hp_ref[:, 0:HZ, :] = zrows                  # sublane-aligned halo rows
        acc_hp_ref[:, HZ + H:Hp, :] = zrows
        cnt_hp_ref[:, 0:HZ, :] = zrows
        cnt_hp_ref[:, HZ + H:Hp, :] = zrows
        acc_hp_ref[:, HZ:HZ + H, :] = acc_w
        cnt_hp_ref[:, HZ:HZ + H, :] = cnt_w

        # ---- gaussian pass 2 (H): symmetric tap pairing off the scratch ref ----
        # virtual "same"-conv halo of 4 starts at row HZ - PAD; the center tap
        # lands on row HZ, which is sublane aligned.
        acc = tap[PAD] * acc_hp_ref[:, HZ:HZ + H, :]
        for d in range(1, PAD + 1):
            acc = acc + tap[PAD + d] * (
                acc_hp_ref[:, HZ - d:HZ - d + H, :] + acc_hp_ref[:, HZ + d:HZ + d + H, :])

        # ---- count pass 2 (H): log-doubling over the padded scratch ----
        c = cnt_hp_ref[...]                            # (nb, H + 16, W)
        h2 = c[:, :-1, :] + c[:, 1:, :]
        h4 = h2[:, :-2, :] + h2[:, 2:, :]
        h8 = h4[:, :-4, :] + h4[:, 4:, :]
        base = HZ - PAD
        cnt = h8[:, base:base + H, :] + c[:, base + 2 * PAD:base + 2 * PAD + H, :]

        # non_masked_num[non_masked_num == 0] = 1 : cnt is a non-negative integer
        # in f32, so maximum is equivalent (1 VALU op instead of cmp+select).
        cnt = jnp.maximum(cnt, jnp.float32(1.0))
        # EUP approx reciprocal + one Newton step (rel err ~2^-24).
        r = pl.reciprocal(cnt, approx=True)
        r = r * (jnp.float32(2.0) - cnt * r)

        # acc already includes the x(9*9) factor via the scaled taps.
        out_ref[...] = acc * msk * r

    return body


def _tpu_vmem_capacity_bytes():
    try:
        info = pltpu.get_tpu_info()
        cap = int(getattr(info, "vmem_capacity_bytes", 0) or 0)
        if cap > 0:
            return cap
    except Exception:
        pass
    return 128 * 1024 * 1024


def _choose_block_n(N, H, W, target_bytes):
    """Batch elements per grid step: big enough to amortize the ~0.35us per-step
    overhead, small enough that ~10 live block-sized intermediates + double-buffered
    I/O fit in VMEM, and leaving >= 2 grid steps when N >= 2 so both v7x cores work."""
    per_img = H * W * 4
    nb = max(1, min(N, target_bytes // max(per_img, 1)))
    if N >= 2:
        nb = min(nb, max(1, N // 2))
    while N % nb:        # keep blocks evenly dividing N (no ragged batch tail)
        nb -= 1
    return nb


def reconstruct_seg_interpolation(x):
    img = x["image"]          # (N, 1, H, W)
    mask = x["mask"]          # (N, 1, H, W)
    _ = x["segmentation"]     # read but unused by the torch forward pass

    N, C, H, W = img.shape
    assert C == 1, "gaussian conv weight is (1,1,9,9) -> single channel input"

    img2 = img[:, 0].astype(jnp.float32)
    msk2 = mask[:, 0].astype(jnp.float32)

    vmem_cap = _tpu_vmem_capacity_bytes()
    # 128 MiB parts (v5e/v6e): ~4 MiB blocks, 96 MiB scoped limit.
    # 64  MiB parts (v7x)   : ~2 MiB blocks, <=48 MiB scoped limit (headroom, no spill).
    target_block_bytes = max(vmem_cap // 32, 1 << 20)
    vmem_limit = int(min((vmem_cap * 3) // 4, 96 * 1024 * 1024))

    nb = _choose_block_n(N, H, W, target_block_bytes)
    taps_scaled = KSIZE * gaussian_taps_1d()     # 9 * g1; (9*g1)⊗(9*g1) = 81 * gk

    out = pl.pallas_call(
        _make_body(nb, H, W, taps_scaled),
        out_shape=jax.ShapeDtypeStruct((N, H, W), jnp.float32),
        grid=(N // nb,),
        in_specs=[
            pl.BlockSpec((nb, H, W), lambda i: (i, 0, 0)),
            pl.BlockSpec((nb, H, W), lambda i: (i, 0, 0)),
        ],
        out_specs=pl.BlockSpec((nb, H, W), lambda i: (i, 0, 0)),
        scratch_shapes=[
            pltpu.VMEM((nb, H + 2 * HZ, W), jnp.float32),   # padded gaussian W-pass
            pltpu.VMEM((nb, H + 2 * HZ, W), jnp.float32),   # padded count W-pass
        ],
        compiler_params=pltpu.CompilerParams(
            dimension_semantics=("parallel",),
            vmem_limit_bytes=vmem_limit,
        ),
    )(img2, msk2)

    return out[:, None, :, :]  # back to NCHW


def _reference(img, mask):
    """Plain-JAX reference (mirrors F.conv2d path) for correctness check."""
    gk = jnp.asarray(gaussian_kernel_np(), jnp.float32)[None, None]
    ones = jnp.ones_like(gk)
    dn = ("NCHW", "OIHW", "NCHW")
    pad = [(PAD, PAD), (PAD, PAD)]
    recon = jax.lax.conv_general_dilated(img, gk, (1, 1), pad, dimension_numbers=dn)
    nmn = jax.lax.conv_general_dilated(mask, ones, (1, 1), pad, dimension_numbers=dn)
    nmn = jnp.where(nmn == 0.0, 1.0, nmn)
    return recon * (KSIZE * KSIZE) * mask / nmn


if __name__ == "__main__":
    key = jax.random.PRNGKey(0)
    k_img, k_msk, k_seg = jax.random.split(key, 3)

    N, C, H, W = 2, 1, 16, 16
    img = jax.random.uniform(k_img, (N, C, H, W), dtype=jnp.float32)
    mask = (jax.random.uniform(k_msk, (N, C, H, W)) > 0.5).astype(jnp.float32)
    seg = jax.random.randint(k_seg, (N, C, H, W), 0, 4).astype(jnp.float32)

    x = {"image": img, "segmentation": seg, "mask": mask}

    out = reconstruct_seg_interpolation(x)
    out = jax.block_until_ready(out)

    ref = jax.block_until_ready(_reference(img.astype(jnp.float32),
                                           mask.astype(jnp.float32)))
    np.testing.assert_allclose(np.asarray(out), np.asarray(ref), rtol=1e-4, atol=1e-5)

    print("KERNEL_OK")
</pallas_src>

<mosaic_0001>
module attributes {stable_mosaic.version = 11 : i64} {
  func.func @body(%arg0: i32, %arg1: memref<1x16x16xf32, #tpu.memory_space<vmem>>, %arg2: memref<1x16x16xf32, #tpu.memory_space<vmem>>, %arg3: memref<1x16x16xf32, #tpu.memory_space<vmem>>, %arg4: memref<1x32x16xf32, #tpu.memory_space<vmem>>, %arg5: memref<1x32x16xf32, #tpu.memory_space<vmem>>) attributes {dimension_semantics = [#tpu.dimension_semantics<parallel>], iteration_bounds = array<i64: 2>, scalar_prefetch = 0 : i64, scratch_operands = 2 : i64, tpu.core_type = #tpu.core_type<tc>, window_params = [{transform_indices = @transform_0, window_bounds = array<i64: 1, 16, 16>}, {transform_indices = @transform_1, window_bounds = array<i64: 1, 16, 16>}, {transform_indices = @transform_2, window_bounds = array<i64: 1, 16, 16>}]} {
    %c0 = arith.constant 0 : index
    %c0_0 = arith.constant 0 : index
    %c0_1 = arith.constant 0 : index
    %0 = vector.load %arg1[%c0, %c0_0, %c0_1] : memref<1x16x16xf32, #tpu.memory_space<vmem>>, vector<1x16x16xf32>
    %c0_2 = arith.constant 0 : index
    %c0_3 = arith.constant 0 : index
    %c0_4 = arith.constant 0 : index
    %1 = vector.load %arg2[%c0_2, %c0_3, %c0_4] : memref<1x16x16xf32, #tpu.memory_space<vmem>>, vector<1x16x16xf32>
    %cst = arith.constant 0.000000e+00 : f32
    %2 = vector.broadcast %cst : f32 to vector<1x16x4xf32>
    %3 = tpu.concatenate %2, %0, %2 in 2 : vector<1x16x4xf32>, vector<1x16x16xf32>, vector<1x16x4xf32> -> vector<1x16x24xf32>
    %4 = tpu.concatenate %2, %1, %2 in 2 : vector<1x16x4xf32>, vector<1x16x16xf32>, vector<1x16x4xf32> -> vector<1x16x24xf32>
    %5 = vector.extract_strided_slice %3 {offsets = [0, 0, 4], sizes = [1, 16, 16], strides = [1, 1, 1]} : vector<1x16x24xf32> to vector<1x16x16xf32>
    %cst_5 = arith.constant 1.03345525 : f32
    %6 = vector.broadcast %cst_5 : f32 to vector<1x16x16xf32>
    %7 = arith.mulf %6, %5 : vector<1x16x16xf32>
    %8 = vector.extract_strided_slice %3 {offsets = [0, 0, 3], sizes = [1, 16, 16], strides = [1, 1, 1]} : vector<1x16x24xf32> to vector<1x16x16xf32>
    %9 = vector.extract_strided_slice %3 {offsets = [0, 0, 5], sizes = [1, 16, 16], strides = [1, 1, 1]} : vector<1x16x24xf32> to vector<1x16x16xf32>
    %10 = arith.addf %8, %9 : vector<1x16x16xf32>
    %cst_6 = arith.constant 1.02830088 : f32
    %11 = vector.broadcast %cst_6 : f32 to vector<1x16x16xf32>
    %12 = arith.mulf %11, %10 : vector<1x16x16xf32>
    %13 = arith.addf %7, %12 : vector<1x16x16xf32>
    %14 = vector.extract_strided_slice %3 {offsets = [0, 0, 2], sizes = [1, 16, 16], strides = [1, 1, 1]} : vector<1x16x24xf32> to vector<1x16x16xf32>
    %15 = vector.extract_strided_slice %3 {offsets = [0, 0, 6], sizes = [1, 16, 16], strides = [1, 1, 1]} : vector<1x16x24xf32> to vector<1x16x16xf32>
    %16 = arith.addf %14, %15 : vector<1x16x16xf32>
    %cst_7 = arith.constant 1.01299143 : f32
    %17 = vector.broadcast %cst_7 : f32 to vector<1x16x16xf32>
    %18 = arith.mulf %17, %16 : vector<1x16x16xf32>
    %19 = arith.addf %13, %18 : vector<1x16x16xf32>
    %20 = vector.extract_strided_slice %3 {offsets = [0, 0, 1], sizes = [1, 16, 16], strides = [1, 1, 1]} : vector<1x16x24xf32> to vector<1x16x16xf32>
    %21 = vector.extract_strided_slice %3 {offsets = [0, 0, 7], sizes = [1, 16, 16], strides = [1, 1, 1]} : vector<1x16x24xf32> to vector<1x16x16xf32>
    %22 = arith.addf %20, %21 : vector<1x16x16xf32>
    %cst_8 = arith.constant 0.987980604 : f32
    %23 = vector.broadcast %cst_8 : f32 to vector<1x16x16xf32>
    %24 = arith.mulf %23, %22 : vector<1x16x16xf32>
    %25 = arith.addf %19, %24 : vector<1x16x16xf32>
    %26 = vector.extract_strided_slice %3 {offsets = [0, 0, 0], sizes = [1, 16, 16], strides = [1, 1, 1]} : vector<1x16x24xf32> to vector<1x16x16xf32>
    %27 = vector.extract_strided_slice %3 {offsets = [0, 0, 8], sizes = [1, 16, 16], strides = [1, 1, 1]} : vector<1x16x24xf32> to vector<1x16x16xf32>
    %28 = arith.addf %26, %27 : vector<1x16x16xf32>
    %cst_9 = arith.constant 0.953999459 : f32
    %29 = vector.broadcast %cst_9 : f32 to vector<1x16x16xf32>
    %30 = arith.mulf %29, %28 : vector<1x16x16xf32>
    %31 = arith.addf %25, %30 : vector<1x16x16xf32>
    %32 = vector.extract_strided_slice %4 {offsets = [0, 0, 0], sizes = [1, 16, 23], strides = [1, 1, 1]} : vector<1x16x24xf32> to vector<1x16x23xf32>
    %33 = vector.extract_strided_slice %4 {offsets = [0, 0, 1], sizes = [1, 16, 23], strides = [1, 1, 1]} : vector<1x16x24xf32> to vector<1x16x23xf32>
    %34 = arith.addf %32, %33 : vector<1x16x23xf32>
    %35 = vector.extract_strided_slice %34 {offsets = [0, 0, 0], sizes = [1, 16, 21], strides = [1, 1, 1]} : vector<1x16x23xf32> to vector<1x16x21xf32>
    %36 = vector.extract_strided_slice %34 {offsets = [0, 0, 2], sizes = [1, 16, 21], strides = [1, 1, 1]} : vector<1x16x23xf32> to vector<1x16x21xf32>
    %37 = arith.addf %35, %36 : vector<1x16x21xf32>
    %38 = vector.extract_strided_slice %37 {offsets = [0, 0, 0], sizes = [1, 16, 17], strides = [1, 1, 1]} : vector<1x16x21xf32> to vector<1x16x17xf32>
    %39 = vector.extract_strided_slice %37 {offsets = [0, 0, 4], sizes = [1, 16, 17], strides = [1, 1, 1]} : vector<1x16x21xf32> to vector<1x16x17xf32>
    %40 = arith.addf %38, %39 : vector<1x16x17xf32>
    %41 = vector.extract_strided_slice %40 {offsets = [0, 0, 0], sizes = [1, 16, 16], strides = [1, 1, 1]} : vector<1x16x17xf32> to vector<1x16x16xf32>
    %42 = vector.extract_strided_slice %4 {offsets = [0, 0, 8], sizes = [1, 16, 16], strides = [1, 1, 1]} : vector<1x16x24xf32> to vector<1x16x16xf32>
    %43 = arith.addf %41, %42 : vector<1x16x16xf32>
    %cst_10 = arith.constant 0.000000e+00 : f32
    %44 = vector.broadcast %cst_10 : f32 to vector<1x8x16xf32>
    %c0_11 = arith.constant 0 : index
    %c0_12 = arith.constant 0 : index
    %c0_13 = arith.constant 0 : index
    %45 = vector.load %arg4[%c0_11, %c0_12, %c0_13] : memref<1x32x16xf32, #tpu.memory_space<vmem>>, vector<1x8x16xf32>
    tpu.vector_store %arg4[%c0_11, %c0_12, %c0_13], %44 {strides = array<i32>} : memref<1x32x16xf32, #tpu.memory_space<vmem>>, vector<1x8x16xf32>,
    %c0_14 = arith.constant 0 : index
    %c24 = arith.constant 24 : index
    %c0_15 = arith.constant 0 : index
    %46 = vector.load %arg4[%c0_14, %c24, %c0_15] : memref<1x32x16xf32, #tpu.memory_space<vmem>>, vector<1x8x16xf32>
    tpu.vector_store %arg4[%c0_14, %c24, %c0_15], %44 {strides = array<i32>} : memref<1x32x16xf32, #tpu.memory_space<vmem>>, vector<1x8x16xf32>,
    %c0_16 = arith.constant 0 : index
    %c0_17 = arith.constant 0 : index
    %c0_18 = arith.constant 0 : index
    %47 = vector.load %arg5[%c0_16, %c0_17, %c0_18] : memref<1x32x16xf32, #tpu.memory_space<vmem>>, vector<1x8x16xf32>
    tpu.vector_store %arg5[%c0_16, %c0_17, %c0_18], %44 {strides = array<i32>} : memref<1x32x16xf32, #tpu.memory_space<vmem>>, vector<1x8x16xf32>,
    %c0_19 = arith.constant 0 : index
    %c24_20 = arith.constant 24 : index
    %c0_21 = arith.constant 0 : index
    %48 = vector.load %arg5[%c0_19, %c24_20, %c0_21] : memref<1x32x16xf32, #tpu.memory_space<vmem>>, vector<1x8x16xf32>
    tpu.vector_store %arg5[%c0_19, %c24_20, %c0_21], %44 {strides = array<i32>} : memref<1x32x16xf32, #tpu.memory_space<vmem>>, vector<1x8x16xf32>,
    %c0_22 = arith.constant 0 : index
    %c8 = arith.constant 8 : index
    %c0_23 = arith.constant 0 : index
    %49 = vector.load %arg4[%c0_22, %c8, %c0_23] : memref<1x32x16xf32, #tpu.memory_space<vmem>>, vector<1x16x16xf32>
    tpu.vector_store %arg4[%c0_22, %c8, %c0_23], %31 {strides = array<i32>} : memref<1x32x16xf32, #tpu.memory_space<vmem>>, vector<1x16x16xf32>,
    %c0_24 = arith.constant 0 : index
    %c8_25 = arith.constant 8 : index
    %c0_26 = arith.constant 0 : index
    %50 = vector.load %arg5[%c0_24, %c8_25, %c0_26] : memref<1x32x16xf32, #tpu.memory_space<vmem>>, vector<1x16x16xf32>
    tpu.vector_store %arg5[%c0_24, %c8_25, %c0_26], %43 {strides = array<i32>} : memref<1x32x16xf32, #tpu.memory_space<vmem>>, vector<1x16x16xf32>,
    %c0_27 = arith.constant 0 : index
    %c8_28 = arith.constant 8 : index
    %c0_29 = arith.constant 0 : index
    %51 = vector.load %arg4[%c0_27, %c8_28, %c0_29] : memref<1x32x16xf32, #tpu.memory_space<vmem>>, vector<1x16x16xf32>
    %cst_30 = arith.constant 1.03345525 : f32
    %52 = vector.broadcast %cst_30 : f32 to vector<1x16x16xf32>
    %53 = arith.mulf %52, %51 : vector<1x16x16xf32>
    %c0_31 = arith.constant 0 : index
    %c7 = arith.constant 7 : index
    %c0_32 = arith.constant 0 : index
    %54 = vector.load %arg4[%c0_31, %c7, %c0_32] : memref<1x32x16xf32, #tpu.memory_space<vmem>>, vector<1x16x16xf32>
    %c0_33 = arith.constant 0 : index
    %c9 = arith.constant 9 : index
    %c0_34 = arith.constant 0 : index
    %55 = vector.load %arg4[%c0_33, %c9, %c0_34] : memref<1x32x16xf32, #tpu.memory_space<vmem>>, vector<1x16x16xf32>
    %56 = arith.addf %54, %55 : vector<1x16x16xf32>
    %cst_35 = arith.constant 1.02830088 : f32
    %57 = vector.broadcast %cst_35 : f32 to vector<1x16x16xf32>
    %58 = arith.mulf %57, %56 : vector<1x16x16xf32>
    %59 = arith.addf %53, %58 : vector<1x16x16xf32>
    %c0_36 = arith.constant 0 : index
    %c6 = arith.constant 6 : index
    %c0_37 = arith.constant 0 : index
    %60 = vector.load %arg4[%c0_36, %c6, %c0_37] : memref<1x32x16xf32, #tpu.memory_space<vmem>>, vector<1x16x16xf32>
    %c0_38 = arith.constant 0 : index
    %c10 = arith.constant 10 : index
    %c0_39 = arith.constant 0 : index
    %61 = vector.load %arg4[%c0_38, %c10, %c0_39] : memref<1x32x16xf32, #tpu.memory_space<vmem>>, vector<1x16x16xf32>
    %62 = arith.addf %60, %61 : vector<1x16x16xf32>
    %cst_40 = arith.constant 1.01299143 : f32
    %63 = vector.broadcast %cst_40 : f32 to vector<1x16x16xf32>
    %64 = arith.mulf %63, %62 : vector<1x16x16xf32>
    %65 = arith.addf %59, %64 : vector<1x16x16xf32>
    %c0_41 = arith.constant 0 : index
    %c5 = arith.constant 5 : index
    %c0_42 = arith.constant 0 : index
    %66 = vector.load %arg4[%c0_41, %c5, %c0_42] : memref<1x32x16xf32, #tpu.memory_space<vmem>>, vector<1x16x16xf32>
    %c0_43 = arith.constant 0 : index
    %c11 = arith.constant 11 : index
    %c0_44 = arith.constant 0 : index
    %67 = vector.load %arg4[%c0_43, %c11, %c0_44] : memref<1x32x16xf32, #tpu.memory_space<vmem>>, vector<1x16x16xf32>
    %68 = arith.addf %66, %67 : vector<1x16x16xf32>
    %cst_45 = arith.constant 0.987980604 : f32
    %69 = vector.broadcast %cst_45 : f32 to vector<1x16x16xf32>
    %70 = arith.mulf %69, %68 : vector<1x16x16xf32>
    %71 = arith.addf %65, %70 : vector<1x16x16xf32>
    %c0_46 = arith.constant 0 : index
    %c4 = arith.constant 4 : index
    %c0_47 = arith.constant 0 : index
    %72 = vector.load %arg4[%c0_46, %c4, %c0_47] : memref<1x32x16xf32, #tpu.memory_space<vmem>>, vector<1x16x16xf32>
    %c0_48 = arith.constant 0 : index
    %c12 = arith.constant 12 : index
    %c0_49 = arith.constant 0 : index
    %73 = vector.load %arg4[%c0_48, %c12, %c0_49] : memref<1x32x16xf32, #tpu.memory_space<vmem>>, vector<1x16x16xf32>
    %74 = arith.addf %72, %73 : vector<1x16x16xf32>
    %cst_50 = arith.constant 0.953999459 : f32
    %75 = vector.broadcast %cst_50 : f32 to vector<1x16x16xf32>
    %76 = arith.mulf %75, %74 : vector<1x16x16xf32>
    %77 = arith.addf %71, %76 : vector<1x16x16xf32>
    %c0_51 = arith.constant 0 : index
    %c0_52 = arith.constant 0 : index
    %c0_53 = arith.constant 0 : index
    %78 = vector.load %arg5[%c0_51, %c0_52, %c0_53] : memref<1x32x16xf32, #tpu.memory_space<vmem>>, vector<1x32x16xf32>
    %79 = vector.extract_strided_slice %78 {offsets = [0, 0, 0], sizes = [1, 31, 16], strides = [1, 1, 1]} : vector<1x32x16xf32> to vector<1x31x16xf32>
    %80 = vector.extract_strided_slice %78 {offsets = [0, 1, 0], sizes = [1, 31, 16], strides = [1, 1, 1]} : vector<1x32x16xf32> to vector<1x31x16xf32>
    %81 = arith.addf %79, %80 : vector<1x31x16xf32>
    %82 = vector.extract_strided_slice %81 {offsets = [0, 0, 0], sizes = [1, 29, 16], strides = [1, 1, 1]} : vector<1x31x16xf32> to vector<1x29x16xf32>
    %83 = vector.extract_strided_slice %81 {offsets = [0, 2, 0], sizes = [1, 29, 16], strides = [1, 1, 1]} : vector<1x31x16xf32> to vector<1x29x16xf32>
    %84 = arith.addf %82, %83 : vector<1x29x16xf32>
    %85 = vector.extract_strided_slice %84 {offsets = [0, 0, 0], sizes = [1, 25, 16], strides = [1, 1, 1]} : vector<1x29x16xf32> to vector<1x25x16xf32>
    %86 = vector.extract_strided_slice %84 {offsets = [0, 4, 0], sizes = [1, 25, 16], strides = [1, 1, 1]} : vector<1x29x16xf32> to vector<1x25x16xf32>
    %87 = arith.addf %85, %86 : vector<1x25x16xf32>
    %88 = vector.extract_strided_slice %87 {offsets = [0, 4, 0], sizes = [1, 16, 16], strides = [1, 1, 1]} : vector<1x25x16xf32> to vector<1x16x16xf32>
    %89 = vector.extract_strided_slice %78 {offsets = [0, 12, 0], sizes = [1, 16, 16], strides = [1, 1, 1]} : vector<1x32x16xf32> to vector<1x16x16xf32>
    %90 = arith.addf %88, %89 : vector<1x16x16xf32>
    %cst_54 = arith.constant 1.000000e+00 : f32
    %91 = vector.broadcast %cst_54 : f32 to vector<1x16x16xf32>
    %92 = arith.maximumf %90, %91 : vector<1x16x16xf32>
    %93 = tpu.reciprocal %92 {approx = true} : vector<1x16x16xf32> -> vector<1x16x16xf32>
    %94 = arith.mulf %92, %93 : vector<1x16x16xf32>
    %cst_55 = arith.constant 2.000000e+00 : f32
    %95 = vector.broadcast %cst_55 : f32 to vector<1x16x16xf32>
    %96 = arith.subf %95, %94 : vector<1x16x16xf32>
    %97 = arith.mulf %93, %96 : vector<1x16x16xf32>
    %98 = arith.mulf %77, %1 : vector<1x16x16xf32>
    %99 = arith.mulf %98, %97 : vector<1x16x16xf32>
    %c0_56 = arith.constant 0 : index
    %c0_57 = arith.constant 0 : index
    %c0_58 = arith.constant 0 : index
    %100 = vector.load %arg3[%c0_56, %c0_57, %c0_58] : memref<1x16x16xf32, #tpu.memory_space<vmem>>, vector<1x16x16xf32>
    tpu.vector_store %arg3[%c0_56, %c0_57, %c0_58], %99 {strides = array<i32>} : memref<1x16x16xf32, #tpu.memory_space<vmem>>, vector<1x16x16xf32>,
    return
  }
  func.func @transform_0(%arg0: i32) -> (i32, i32, i32) {
    %c0_i32 = arith.constant 0 : i32
    %c0_i32_0 = arith.constant 0 : i32
    %c0_i32_1 = arith.constant 0 : i32
    return %arg0, %c0_i32, %c0_i32_0 : i32, i32, i32
  }
  func.func @transform_1(%arg0: i32) -> (i32, i32, i32) {
    %c0_i32 = arith.constant 0 : i32
    %c0_i32_0 = arith.constant 0 : i32
    %c0_i32_1 = arith.constant 0 : i32
    return %arg0, %c0_i32, %c0_i32_0 : i32, i32, i32
  }
  func.func @transform_2(%arg0: i32) -> (i32, i32, i32) {
    %c0_i32 = arith.constant 0 : i32
    %c0_i32_0 = arith.constant 0 : i32
    %c0_i32_1 = arith.constant 0 : i32
    return %arg0, %c0_i32, %c0_i32_0 : i32, i32, i32
  }
}

</mosaic_0001>

<bundles_post_ra>
// kernel: tpu_custom_call.1
= control target key start
LH: loop header
LB: loop body
LE: loop exit
PB: predicated region body
PF: predicated region fallthrough
CT: control target
= control target key end

     0   :  { %7 = vsyncpa [#allocation5], 0  ;;  %s1168_s0 = inlined_call_operand.hbm [shape: f32[2,16,16], index: 0, kind: input, shape index: {}]   ;;  %s1169_s1 = inlined_call_operand.hbm [shape: f32[2,16,16], index: 1, kind: input, shape index: {}]   ;;  %s1170_s2 = inlined_call_operand.hbm [shape: f32[2,16,16], index: 2, kind: output, shape index: {}]  }
   0x1   :  { %9 = vsyncpa [#allocation5 + $0x1], 0 }
   0x2   :  { %10 = vsyncpa [#allocation8], 0 }
   0x3   :  { %12 = vsyncpa [#allocation8 + $0x1], 0 }
   0x4   :  { %13 = vsyncpa [#allocation6], 0 }
   0x5   :  { %15 = vsyncpa [#allocation6 + $0x1], 0  ;;  %s870_s9 = smov 0   ;;  %s872_s10 = smov 0  }
   0x6   :  { %s874_s11 = smov 0   ;;  %s876_s12 = smov 0  }
   0x7 LB: > { %s891_s13 = sadd.s32 4294967295, %s836_s12   ;;  %s620_s14 = sadd.s32 4294967294, %s836_s12   ;;  %s836_s12 = sphi %s876_s12, %s1186_s12   ;;  %s832_s11 = sphi %s874_s11, %s1185_s11   ;;  %s828_s10 = sphi %s872_s10, %s1184_s10   ;;  %s824_s9 = sphi %s870_s9, %s1183_s9  }
   0x8   : > { %s895_s15 = sadd.s32 1, %s836_s12   ;;  %s28_s16 = sadd.s32 1, %s832_s11 }
   0x9   : > { %s25_s17 = ssub.s32 %s836_s12, %s895_s15  ;;  %p35_p0 = scmp.ne.s32.totalorder %s832_s11, %s828_s10 }
   0xa   : > { %p26_p1 = scmp.eq.s32.totalorder %s25_s17, 0  ;;  %p36_p2 = scmp.eq.s32.totalorder %s836_s12, 0 }
   0xb   : > { %p41_p3 = scmp.ne.s32.totalorder %s828_s10, %s824_s9  ;;  %p42_p4 = scmp.eq.s32.totalorder %s891_s13, 0 }
   0xc   : > { %s907_s18 = scalar_select %p26_p1, %s832_s11, %s28_s16  }
   0xd   : > { %p909_p5 = por %p36_p2, %p35_p0  ;;  %p913_p6 = por %p42_p4, %p41_p3 }
   0xe   : > { %p91_p7 = scmp.eq.s32.totalorder %s891_s13, 1  ;;  %p97_p8 = scmp.eq.s32.totalorder %s620_s14, 1 }
   0xf   : > { %s1174_s20 = scalar_select %p913_p6, 1, 0 }
  0x10   : > { %p658_p10 = scmp.lt.s32.totalorder %s836_s12, 2  ;;  %p920_p11 = por %p91_p7, %p35_p0 }
  0x11   : > { %p924_p12 = por %p97_p8, %p41_p3  ;;  %s929_s23 = sand.u32 1, %s832_s11  }
  0x12   : > { %s1175_s21 = scalar_select %p920_p11, 1, 0 }
  0x13   : > { %s1176_s22 = scalar_select %p924_p12, 1, 0 }
  0x14   : > { %s638_s24 = sshll.u32 %s836_s12, 8  ;;  %s623_s25 = sshll.u32 %s929_s23, 4 }
  0x15   : > { %s938_s28 = scalar_lea.hbm %s1168_s0, %s638_s24  ;;  %s121_s29 = scalar_lea.vmem [#allocation4], %s623_s25 }
  0x16   : > { %s128_s30 = sshll.u32 %s121_s29, 4  ;;  %p944_p13 = pnand %p658_p10, %p909_p5  ;;  %s948_s30 = int_to_ptr.vmem [resolvable:$true] %s128_s30 }
  0x17   : > { %s118_s4 = scalar_lea.sflag [#allocation5], %s929_s23  ;;  %s712_s5 = scalar_lea.hbm %s938_s28, 256 }
  0x18   : > { %p713_p0 = scmp.ne.s32.totalorder %s938_s28, %s712_s5  ;;  %p714_p1 = pneg %p944_p13 }
  0x19   : > { %s717_s8 = scalar_lea.hbm %s1168_s0, 512  ;;  %p718_p4 = scmp.lt.s32.totalorder %s938_s28, %s1168_s0 }
  0x1a   : > { %p715_p2 = pnand %p714_p1, %p713_p0  ;;  %p719_p5 = scmp.lt.s32.totalorder %s717_s8, %s712_s5 }
  0x1c   : > { %p716_p3 = pneg %p715_p2  ;;  %p720_p7 = por %p719_p5, %p718_p4 }
  0x1e   : > { %p721_p8 = pnand %p720_p7, %p716_p3 }
  0x20   : > { %724 = shalt.err (!%p721_p8)
}
  0x21   : > { %s725_s17 = scalar_lea.vmem %s948_s30, 256  ;;  %s838_s19 = smov [#allocation4]  }
  0x22   : > { %p726_p10 = scmp.ne.s32.totalorder %s948_s30, %s725_s17  ;;  %s730_s26 = sshll.u32 %s838_s19, 4  ;;  %s731_s26 = int_to_ptr.vmem [resolvable:$false] %s730_s26 }
  0x23   : > { %s732_s27 = scalar_lea.vmem %s731_s26, 512  ;;  %p733_p9 = scmp.lt.s32.totalorder %s948_s30, %s731_s26 }
  0x24   : > { %p728_p0 = pnand %p726_p10, %p714_p1  ;;  %p734_p12 = scmp.lt.s32.totalorder %s732_s27, %s725_s17 }
  0x26   : > { %p729_p2 = pneg %p728_p0  ;;  %p735_p11 = por %p734_p12, %p733_p9 }
  0x28   : > { %p736_p4 = pnand %p735_p11, %p729_p2 }
  0x2a   : > { %739 = shalt.err (!%p736_p4)
}
  0x2b   : > { %s839_s29 = smov 128   ;;  %s840_s5 = smov 8  }
  0x2c   : > { %650 = dma.hbm_to_vmem [thread:$0]  (!%p944_p13), %s938_s28, 256, %s948_s30, %s118_s4, %s839_s29, %s839_s29, %s840_s5  }
  0x2d   : > { %p629_p9 = scmp.ge.s32.totalorder %s836_s12, 1  ;;  %p157_p11 = scmp.lt.s32.totalorder %s836_s12, 3 }
  0x2e   : > { %s991_s14 = scalar_lea.hbm %s1169_s1, %s638_s24  ;;  %s142_s16 = scalar_lea.vmem [#allocation7], %s623_s25 }
  0x2f   : > { %p982_p12 = pnand %p629_p9, %p157_p11  ;;  %s149_s17 = sshll.u32 %s142_s16, 4  ;;  %s995_s17 = int_to_ptr.vmem [resolvable:$true] %s149_s17 }
  0x30   : > { %s139_s28 = scalar_lea.sflag [#allocation8], %s929_s23  ;;  %s740_s30 = scalar_lea.hbm %s991_s14, 256 }
  0x31   : > { %p741_p3 = scmp.ne.s32.totalorder %s991_s14, %s740_s30  ;;  %s745_s24 = scalar_lea.hbm %s1169_s1, 512 }
  0x32   : > { %p746_p8 = scmp.lt.s32.totalorder %s991_s14, %s1169_s1  ;;  %p747_p10 = scmp.lt.s32.totalorder %s745_s24, %s740_s30 }
  0x33   : > { %p743_p5 = pnand %p741_p3, %p714_p1 }
  0x34   : > { %p748_p0 = por %p747_p10, %p746_p8 }
  0x35   : > { %p744_p7 = pneg %p743_p5 }
  0x37   : > { %p749_p2 = pnand %p748_p0, %p744_p7 }
  0x39   : > { %752 = shalt.err (!%p749_p2)
}
  0x3a   : > { %s753_s23 = scalar_lea.vmem %s995_s17, 256  ;;  %s841_s25 = smov [#allocation7]  }
  0x3b   : > { %p754_p4 = scmp.ne.s32.totalorder %s995_s17, %s753_s23  ;;  %s758_s7 = sshll.u32 %s841_s25, 4  ;;  %s759_s7 = int_to_ptr.vmem [resolvable:$false] %s758_s7 }
  0x3c   : > { %s760_s8 = scalar_lea.vmem %s759_s7, 512  ;;  %p761_p3 = scmp.lt.s32.totalorder %s995_s17, %s759_s7 }
  0x3d   : > { %p756_p9 = pnand %p754_p4, %p714_p1  ;;  %p762_p5 = scmp.lt.s32.totalorder %s760_s8, %s753_s23 }
  0x3f   : > { %p757_p11 = pneg %p756_p9  ;;  %p763_p6 = por %p762_p5, %p761_p3 }
  0x41   : > { %p764_p8 = pnand %p763_p6, %p757_p11 }
  0x43   : > { %767 = shalt.err (!%p764_p8)
}
  0x44   : > { %653 = dma.hbm_to_vmem [thread:$0]  (!%p944_p13), %s991_s14, 256, %s995_s17, %s139_s28, %s839_s29, %s839_s29, %s840_s5  }
  0x45   : > { %161 = sbr.rel (%p982_p12) target bundleno = 622 (0x26e), region = 28  ;;  %s1026_s16 = sand.u32 (!%p982_p12), 1, %s828_s10  }
  0x46   : > { %s1029_s30 = sshll.u32 (!%p982_p12), %s1026_s16, 4  ;;  %s164_s4 = scalar_lea.sflag (!%p982_p12), [#allocation5], %s1026_s16 }
  0x47   : > { %s167_s3 = scalar_lea.vmem (!%p982_p12), [#allocation4], %s1029_s30  ;;  %p1179_p6 = scmp.ne.s32.totalorder (!%p982_p12), %s1174_s20, 0 }
  0x4a   : > { %811 = dma.done.wait (%p1179_p6), %s164_s4, 256  }
  0x4b   : > { %813 = vsyncadd (%p1179_p6), %s164_s4, 4294967040  ;;  %s173_s29 = scalar_lea.sflag [#allocation8], %s1026_s16  ;;  %s176_s5 = scalar_lea.vmem [#allocation7], %s1029_s30 }
  0x4c   : > { %815 = dma.done.wait (%p1179_p6), %s173_s29, 256  }
  0x4d   : > { %817 = vsyncadd (%p1179_p6), %s173_s29, 4294967040  ;;  %v1043_v0 = vld [vmem:[%s176_s5] sm:$0xff]  ;;  %s842_s6 = smov 4   ;;  %v1048_v2 = vld [vmem:[%s176_s5 + $0x8] sm:$0xff]  ;;  %vm214_vm0 = vcmask 31744   ;;  %vm217_vm1 = vcmask 162816  }
  0x4e   : > { %v202_v1 = vld [vmem:[%s167_s3] sm:$0xff]  ;;  %222 = vrot.lane.b32.xlu0 %v1043_v0, %s842_s6  ;;  %v203_v3 = vld [vmem:[%s167_s3 + $0x8] sm:$0xff]  ;;  %s843_s20 = smov 127   ;;  %s844_s14 = smov 126   ;;  %vm354_vm2 = vcmask 130048   ;;  %v851_v44 = vmov 0.0  }
  0x4f   : > { %208 = vrot.lane.b32.xlu1 %v202_v1, %s842_s6  ;;  %s845_s17 = smov 124   ;;  %s846_s28 = smov 122   ;;  %355 = vst.msk [vmem:[#allocation2] sm:$0xff] %vm354_vm2, %v851_v44  ;;  %356 = vst.msk [vmem:[#allocation2 + $0x18] sm:$0xff] %vm354_vm2, %v851_v44  ;;  %vm422_vm3 = vcmask 1046528   ;;  %vm442_vm4 = vcmask 1045504  }
  0x50   : > { %s847_s19 = smov 120   ;;  %s848_s24 = smov 1   ;;  %357 = vst.msk [vmem:[#allocation3] sm:$0xff] %vm354_vm2, %v851_v44  ;;  %358 = vst.msk [vmem:[#allocation3 + $0x18] sm:$0xff] %vm354_vm2, %v851_v44  ;;  %vm462_vm5 = vcmask 1043456  }
  0x51   : > { %s849_s26 = smov 2   ;;  %s850_s27 = smov 3  }
  0x52   : > { %224 = vrot.lane.b32.xlu0 %v1048_v2, %s842_s6  ;;  %s640_s23 = sshll.u32 %s891_s13, 8  ;;  %s201_s25 = scalar_lea.vmem [#allocation9], %s1029_s30 }
  0x53   : > { %210 = vrot.lane.b32.xlu1 %v203_v3, %s842_s6  ;;  %s524_s7 = sshll.u32 %s201_s25, 4  ;;  %s1121_s3 = scalar_lea.hbm %s1170_s2, %s640_s23  ;;  %s1123_s7 = int_to_ptr.vmem [resolvable:$true] %s524_s7 }
  0x54   : > { %s511_s13 = scalar_lea.sflag [#allocation6], %s1026_s16  ;;  %s768_s30 = scalar_lea.vmem %s1123_s7, 256 }
  0x55   : > { %p769_p13 = scmp.ne.s32.totalorder %s1123_s7, %s768_s30  ;;  %p1180_p1 = scmp.ne.s32.totalorder %s1175_s21, 0 }
  0x56   : > { %s852_s29 = smov [#allocation9]  }
  0x57   : > { %p770_p12 = pnand %p769_p13, %p1180_p1  ;;  %s772_s5 = sshll.u32 %s852_s29, 4  ;;  %s773_s5 = int_to_ptr.vmem [resolvable:$false] %s772_s5 }
  0x58   : > { %p775_p10 = scmp.lt.s32.totalorder %s1123_s7, %s773_s5 }
  0x59   : > { %p771_p7 = pneg %p770_p12 }
  0xc0   : > { %v223_v4 = vpop.permute.xlu0 %222 }
  0xc1   : > { %v209_v5 = vpop.permute.xlu1 %208  ;;  %v228_v6 = vsel %vm214_vm0, 0.0, %v223_v4 }
  0xc2   : > { %v215_v7 = vsel %vm214_vm0, 0.0, %v209_v5  ;;  %v1054_v8 = vsel %vm217_vm1, %v228_v6, 0.0 }
  0xc3   : > { %318 = vrot.lane.b32.xlu0 %v1054_v8, %s843_s20  ;;  %v1058_v10 = vsel %vm217_vm1, %v215_v7, 0.0 }
  0xc4   : > { %v225_v9 = vpop.permute.xlu0 %224  ;;  %v232_v52 = vmul.f32 1.0334553, %v1058_v10 }
  0xc5   : > { %v211_v11 = vpop.permute.xlu1 %210  ;;  %v229_v12 = vsel %vm214_vm0, 0.0, %v225_v9 }
  0xc6   : > { %v216_v13 = vsel %vm214_vm0, 0.0, %v211_v11  ;;  %v1061_v14 = vsel %vm217_vm1, %v229_v12, 0.0 }
  0xc7   : > { %320 = vrot.lane.b32.xlu1 %v1061_v14, %s843_s20  ;;  %236 = vrot.lane.b32.xlu0 %v1058_v10, %s844_s14  ;;  %v1066_v15 = vsel %vm217_vm1, %v216_v13, 0.0  ;;  %v414_v13 = vld [vmem:[#allocation3] sm:$0xff] }
  0xc8   : > { %v233_v57 = vmul.f32 1.0334553, %v1066_v15 }
  0xcb   : > { %256 = vrot.lane.b32.xlu0 %v1058_v10, %s845_s17  ;;  %238 = vrot.lane.b32.xlu1 %v1066_v15, %s844_s14 }
  0xcf   : > { %276 = vrot.lane.b32.xlu0 %v1058_v10, %s846_s28  ;;  %258 = vrot.lane.b32.xlu1 %v1066_v15, %s845_s17 }
  0xd3   : > { %296 = vrot.lane.b32.xlu0 %v1058_v10, %s847_s19  ;;  %278 = vrot.lane.b32.xlu1 %v1066_v15, %s846_s28 }
  0xd7   : > { %298 = vrot.lane.b32.xlu1 %v1066_v15, %s847_s19 }
 0x135   : > { %v319_v16 = vpop.permute.xlu0 %318 }
 0x136   : > { %v324_v17 = vadd.f32 %v319_v16, %v1054_v8 }
 0x138   : > { %328 = vrot.lane.b32.xlu0 %v324_v17, %s844_s14 }
 0x139   : > { %v237_v18 = vpop.permute.xlu0 %236  ;;  %v321_v19 = vpop.permute.xlu1 %320 }
 0x13a   : > { %v242_v20 = vadd.f32 %v237_v18, %v1058_v10  ;;  %v325_v21 = vadd.f32 %v321_v19, %v1061_v14 }
 0x13c   : > { %v244_v22 = vmul.f32 1.0283009, %v242_v20  ;;  %330 = vrot.lane.b32.xlu1 %v325_v21, %s844_s14 }
 0x13d   : > { %v257_v23 = vpop.permute.xlu0 %256  ;;  %v239_v24 = vpop.permute.xlu1 %238 }
 0x13e   : > { %v262_v25 = vadd.f32 %v257_v23, %v1058_v10  ;;  %v243_v26 = vadd.f32 %v239_v24, %v1066_v15  ;;  %248 = vrot.lane.b32.xlu0 %v244_v22, %s848_s24 }
 0x140   : > { %v264_v27 = vmul.f32 1.0129914, %v262_v25  ;;  %v245_v28 = vmul.f32 1.0283009, %v243_v26 }
 0x141   : > { %v277_v29 = vpop.permute.xlu0 %276  ;;  %v259_v30 = vpop.permute.xlu1 %258 }
 0x142   : > { %v282_v31 = vadd.f32 %v277_v29, %v1058_v10  ;;  %v263_v32 = vadd.f32 %v259_v30, %v1066_v15  ;;  %268 = vrot.lane.b32.xlu0 %v264_v27, %s849_s26  ;;  %250 = vrot.lane.b32.xlu1 %v245_v28, %s848_s24 }
 0x144   : > { %v284_v33 = vmul.f32 0.9879806, %v282_v31  ;;  %v265_v34 = vmul.f32 1.0129914, %v263_v32 }
 0x145   : > { %v297_v35 = vpop.permute.xlu0 %296  ;;  %v279_v36 = vpop.permute.xlu1 %278 }
 0x146   : > { %v302_v37 = vadd.f32 %v297_v35, %v1058_v10  ;;  %v283_v38 = vadd.f32 %v279_v36, %v1066_v15  ;;  %288 = vrot.lane.b32.xlu0 %v284_v33, %s850_s27  ;;  %270 = vrot.lane.b32.xlu1 %v265_v34, %s849_s26 }
 0x148   : > { %v304_v39 = vmul.f32 0.95399946, %v302_v37  ;;  %v285_v40 = vmul.f32 0.9879806, %v283_v38 }
 0x149   : > { %v299_v41 = vpop.permute.xlu1 %298 }
 0x14a   : > { %v303_v42 = vadd.f32 %v299_v41, %v1066_v15  ;;  %308 = vrot.lane.b32.xlu0 %v304_v39, %s842_s6  ;;  %290 = vrot.lane.b32.xlu1 %v285_v40, %s850_s27  ;;  %v423_v15 = vrot.slane %v414_v13, 1 }
 0x14c   : > { %v305_v43 = vmul.f32 0.95399946, %v303_v42 }
 0x14e   : > { %310 = vrot.lane.b32.xlu1 %v305_v43, %s842_s6  ;;  %s774_s6 = scalar_lea.vmem %s773_s5, 512 }
 0x14f   : > { %p776_p0 = scmp.lt.s32.totalorder %s774_s6, %s768_s30 }
 0x151   : > { %p777_p2 = por %p776_p0, %p775_p10 }
 0x153   : > { %p778_p4 = pnand %p777_p2, %p771_p7 }
 0x1aa   : > { %v329_v45 = vpop.permute.xlu0 %328 }
 0x1ab   : > { %v334_v46 = vadd.f32 %v329_v45, %v324_v17 }
 0x1ad   : > { %338 = vrot.lane.b32.xlu0 %v334_v46, %s845_s17 }
 0x1ae   : > { %v331_v47 = vpop.permute.xlu1 %330 }
 0x1af   : > { %v335_v48 = vadd.f32 %v331_v47, %v325_v21 }
 0x1b0   : > { %v249_v49 = vpop.permute.xlu0 %248 }
 0x1b1   : > { %346 = vrot.lane.b32.xlu0 %v1054_v8, %s847_s19  ;;  %340 = vrot.lane.b32.xlu1 %v335_v48, %s845_s17  ;;  %v254_v53 = vadd.f32 %v249_v49, %v232_v52 }
 0x1b4   : > { %v269_v50 = vpop.permute.xlu0 %268  ;;  %v251_v51 = vpop.permute.xlu1 %250 }
 0x1b5   : > { %348 = vrot.lane.b32.xlu1 %v1061_v14, %s847_s19  ;;  %v274_v56 = vadd.f32 %v269_v50, %v254_v53  ;;  %v255_v58 = vadd.f32 %v251_v51, %v233_v57  ;;  %v417_v14 = vld [vmem:[#allocation3 + $0x18] sm:$0xff] }
 0x1b6   : > { %v428_v16 = vrot.slane %v417_v14, 1 }
 0x1b8   : > { %v289_v54 = vpop.permute.xlu0 %288  ;;  %v271_v55 = vpop.permute.xlu1 %270  ;;  %v437_v20 = vadd.f32 %v428_v16, %v417_v14 }
 0x1b9   : > { %v294_v59 = vadd.f32 %v289_v54, %v274_v56  ;;  %v275_v62 = vadd.f32 %v271_v55, %v255_v58 }
 0x1ba   : > { %v448_v27 = vrot.slane %v437_v20, 2 }
 0x1bc   : > { %v309_v60 = vpop.permute.xlu0 %308  ;;  %v291_v61 = vpop.permute.xlu1 %290  ;;  %v457_v34 = vadd.f32 %v448_v27, %v437_v20 }
 0x1bd   : > { %v314_v63 = vadd.f32 %v309_v60, %v294_v59  ;;  %v295_v1 = vadd.f32 %v291_v61, %v275_v62 }
 0x1be   : > { %v468_v44 = vrot.slane %v457_v34, 4 }
 0x1bf   : > { %361 = vrot.lane.b32.xlu0 %v314_v63, %s845_s17 }
 0x1c0   : > { %v311_v3 = vpop.permute.xlu1 %310 }
 0x1c1   : > { %v315_v4 = vadd.f32 %v311_v3, %v295_v1 }
 0x1c3   : > { %363 = vrot.lane.b32.xlu1 %v315_v4, %s845_s17 }
 0x21f   : > { %v339_v5 = vpop.permute.xlu0 %338 }
 0x220   : > { %v344_v6 = vadd.f32 %v339_v5, %v334_v46 }
 0x223   : > { %v347_v7 = vpop.permute.xlu0 %346  ;;  %v341_v8 = vpop.permute.xlu1 %340 }
 0x224   : > { %v352_v9 = vadd.f32 %v347_v7, %v344_v6  ;;  %v345_v10 = vadd.f32 %v341_v8, %v335_v48 }
 0x226   : > { %369 = vst.msk [vmem:[#allocation3 + $0x8] sm:$0xff] %vm354_vm2, %v352_v9 }
 0x227   : > { %v349_v11 = vpop.permute.xlu1 %348 }
 0x228   : > { %v353_v12 = vadd.f32 %v349_v11, %v345_v10 }
 0x22a   : > { %370 = vst.msk [vmem:[#allocation3 + $0x10] sm:$0xff] %vm354_vm2, %v353_v12 }
 0x22d   : > { %v415_v17 = vld [vmem:[#allocation3 + $0x8] sm:$0xff] }
 0x22e   : > { %v424_v18 = vrot.slane %v415_v17, 1 }
 0x230   : > { %v425_v19 = vsel %vm422_vm3, %v423_v15, %v424_v18 }
 0x231   : > { %v362_v21 = vpop.permute.xlu0 %361  ;;  %v416_v22 = vld [vmem:[#allocation3 + $0x10] sm:$0xff]  ;;  %v434_v24 = vadd.f32 %v425_v19, %v414_v13 }
 0x232   : > { %367 = vst.msk [vmem:[#allocation2 + $0x8] sm:$0xff] %vm354_vm2, %v362_v21  ;;  %v426_v23 = vrot.slane %v416_v22, 1 }
 0x233   : > { %v443_v31 = vrot.slane %v434_v24, 2 }
 0x234   : > { %v427_v25 = vsel %vm422_vm3, %v424_v18, %v426_v23  ;;  %v429_v26 = vsel %vm422_vm3, %v426_v23, %v428_v16 }
 0x235   : > { %v364_v28 = vpop.permute.xlu1 %363  ;;  %v435_v29 = vadd.f32 %v427_v25, %v415_v17  ;;  %v436_v30 = vadd.f32 %v429_v26, %v416_v22 }
 0x236   : > { %368 = vst.msk [vmem:[#allocation2 + $0x10] sm:$0xff] %vm354_vm2, %v364_v28 }
 0x237   : > { %v444_v32 = vrot.slane %v435_v29, 2  ;;  %v446_v33 = vrot.slane %v436_v30, 2 }
 0x239   : > { %v445_v35 = vsel %vm442_vm4, %v443_v31, %v444_v32  ;;  %v447_v36 = vsel %vm442_vm4, %v444_v32, %v446_v33  ;;  %v449_v37 = vsel %vm442_vm4, %v446_v33, %v448_v27  ;;  %v375_v56 = vld [vmem:[#allocation2 + $0x7] sm:$0xff] }
 0x23a   : > { %v454_v38 = vadd.f32 %v445_v35, %v434_v24  ;;  %v455_v39 = vadd.f32 %v447_v36, %v435_v29  ;;  %v456_v40 = vadd.f32 %v449_v37, %v436_v30  ;;  %v371_v63 = vld [vmem:[#allocation2 + $0x8] sm:$0xff] }
 0x23b   : > { %v385_v7 = vld [vmem:[#allocation2 + $0x6] sm:$0xff]  ;;  %v373_v9 = vmul.f32 1.0334553, %v371_v63 }
 0x23c   : > { %v463_v41 = vrot.slane %v454_v38, 4  ;;  %v464_v42 = vrot.slane %v455_v39, 4  ;;  %v466_v43 = vrot.slane %v456_v40, 4  ;;  %v395_v18 = vld [vmem:[#allocation2 + $0x5] sm:$0xff] }
 0x23d   : > { %v377_v50 = vld [vmem:[#allocation2 + $0x9] sm:$0xff]  ;;  %v378_v53 = vld [vmem:[#allocation2 + $0x11] sm:$0xff] }
 0x23e   : > { %v465_v45 = vsel %vm462_vm5, %v463_v41, %v464_v42  ;;  %v467_v46 = vsel %vm462_vm5, %v464_v42, %v466_v43  ;;  %v469_v47 = vsel %vm462_vm5, %v466_v43, %v468_v44  ;;  %v376_v52 = vld [vmem:[#allocation2 + $0xf] sm:$0xff]  ;;  %v379_v58 = vadd.f32 %v377_v50, %v375_v56  ;;  %v405_v27 = vld [vmem:[#allocation2 + $0x4] sm:$0xff] }
 0x23f   : > { %v473_v48 = vadd.f32 %v465_v45, %v454_v38  ;;  %v474_v49 = vadd.f32 %v467_v46, %v455_v39  ;;  %v475_v51 = vadd.f32 %v469_v47, %v456_v40  ;;  %v380_v61 = vadd.f32 %v378_v53, %v376_v52  ;;  %v387_v1 = vld [vmem:[#allocation2 + $0xa] sm:$0xff]  ;;  %v388_v6 = vld [vmem:[#allocation2 + $0x12] sm:$0xff] }
 0x240   : > { %v372_v3 = vld [vmem:[#allocation2 + $0x10] sm:$0xff]  ;;  %v381_v4 = vmul.f32 1.0283009, %v379_v58  ;;  %v389_v10 = vadd.f32 %v387_v1, %v385_v7 }
 0x241   : > { %v476_v54 = vadd.f32 %v473_v48, %v415_v17  ;;  %v477_v55 = vadd.f32 %v474_v49, %v416_v22  ;;  %v478_v57 = vadd.f32 %v475_v51, %v417_v14  ;;  %v386_v5 = vld [vmem:[#allocation2 + $0xe] sm:$0xff]  ;;  %v382_v8 = vmul.f32 1.0283009, %v380_v61 }
 0x242   : > { %v374_v11 = vmul.f32 1.0334553, %v372_v3  ;;  %v390_v12 = vadd.f32 %v388_v6, %v386_v5  ;;  %v397_v13 = vld [vmem:[#allocation2 + $0xb] sm:$0xff]  ;;  %v383_v14 = vadd.f32 %v381_v4, %v373_v9  ;;  %v398_v16 = vld [vmem:[#allocation2 + $0x13] sm:$0xff]  ;;  %v391_v19 = vmul.f32 1.0129914, %v389_v10 }
 0x243   : > { %v479_v59 = vmax.f32 %v476_v54, 1.0  ;;  %v480_v60 = vmax.f32 %v477_v55, 1.0  ;;  %v481_v62 = vmax.f32 %v478_v57, 1.0  ;;  %v396_v15 = vld [vmem:[#allocation2 + $0xd] sm:$0xff]  ;;  %v399_v20 = vadd.f32 %v397_v13, %v395_v18 }
 0x244   : > { %v384_v17 = vadd.f32 %v382_v8, %v374_v11  ;;  %v392_v21 = vmul.f32 1.0129914, %v390_v12  ;;  %v400_v22 = vadd.f32 %v398_v16, %v396_v15  ;;  %v406_v23 = vld [vmem:[#allocation2 + $0xc] sm:$0xff]  ;;  %v393_v24 = vadd.f32 %v391_v19, %v383_v14  ;;  %v407_v25 = vld [vmem:[#allocation2 + $0x14] sm:$0xff] }
 0x245   : > { %706 = vrcp.f32 %v479_v59  ;;  %v401_v28 = vmul.f32 0.9879806, %v399_v20  ;;  %v408_v29 = vadd.f32 %v406_v23, %v405_v27  ;;  %v409_v32 = vadd.f32 %v407_v25, %v406_v23 }
 0x246   : > { %708 = vrcp.f32 %v480_v60  ;;  %v394_v26 = vadd.f32 %v392_v21, %v384_v17  ;;  %v402_v31 = vmul.f32 0.9879806, %v400_v22 }
 0x247   : > { %710 = vrcp.f32 %v481_v62  ;;  %v403_v34 = vadd.f32 %v401_v28, %v393_v24  ;;  %v410_v39 = vmul.f32 0.95399946, %v408_v29  ;;  %v411_v42 = vmul.f32 0.95399946, %v409_v32 }
 0x248   : > { %v404_v37 = vadd.f32 %v402_v31, %v394_v26 }
 0x249   : > { %v412_v44 = vadd.f32 %v410_v39, %v403_v34 }
 0x24a   : > { %v413_v47 = vadd.f32 %v411_v42, %v404_v37 }
 0x24b   : > { %v494_v52 = vmul.f32 %v412_v44, %v1043_v0 }
 0x24c   : > { %v495_v54 = vmul.f32 %v413_v47, %v1048_v2 }
 0x252   : > { %v707_v30 = vpop.eup %706 }
 0x253   : > { %v709_v33 = vpop.eup %708  ;;  %v485_v35 = vmul.f32 %v707_v30, %v479_v59 }
 0x254   : > { %v711_v36 = vpop.eup %710  ;;  %v486_v38 = vmul.f32 %v709_v33, %v480_v60 }
 0x255   : > { %v487_v40 = vmul.f32 %v711_v36, %v481_v62  ;;  %v488_v41 = vsub.f32 2.0, %v485_v35 }
 0x256   : > { %v489_v43 = vsub.f32 2.0, %v486_v38 }
 0x257   : > { %v490_v45 = vsub.f32 2.0, %v487_v40  ;;  %v491_v46 = vmul.f32 %v707_v30, %v488_v41 }
 0x258   : > { %v492_v48 = vmul.f32 %v709_v33, %v489_v43 }
 0x259   : > { %v493_v49 = vmul.f32 %v711_v36, %v490_v45  ;;  %v499_v50 = vrot.slane %v491_v46, 4 }
 0x25a   : > { %v500_v51 = vrot.slane %v492_v48, 4 }
 0x25b   : > { %v502_v53 = vrot.slane %v493_v49, 4 }
 0x25c   : > { %v501_v55 = vsel %vm462_vm5, %v499_v50, %v500_v51 }
 0x25d   : > { %v503_v56 = vsel %vm462_vm5, %v500_v51, %v502_v53  ;;  %v506_v57 = vmul.f32 %v501_v55, %v494_v52 }
 0x25e   : > { %v507_v58 = vmul.f32 %v503_v56, %v495_v54 }
 0x25f   : > { %508 = vst.msk [vmem:[%s201_s25] sm:$0xff] %vm354_vm2, %v506_v57 }
 0x260   : > { %509 = vst.msk [vmem:[%s201_s25 + $0x8] sm:$0xff] %vm354_vm2, %v507_v58 }
 0x261   : > { %781 = shalt.err (!%p778_p4)
}
 0x262   : > { %s782_s20 = scalar_lea.hbm %s1121_s3, 256  ;;  %s786_s28 = scalar_lea.hbm %s1170_s2, 512 }
 0x263   : > { %p783_p9 = scmp.ne.s32.totalorder %s1121_s3, %s782_s20  ;;  %p787_p5 = scmp.lt.s32.totalorder %s1121_s3, %s1170_s2 }
 0x264   : > { %p788_p8 = scmp.lt.s32.totalorder %s786_s28, %s782_s20 }
 0x265   : > { %p784_p11 = pnand %p783_p9, %p1180_p1 }
 0x266   : > { %p789_p6 = por %p788_p8, %p787_p5 }
 0x267   : > { %p785_p3 = pneg %p784_p11 }
 0x269   : > { %p790_p13 = pnand %p789_p6, %p785_p3 }
 0x26b   : > { %793 = shalt.err (!%p790_p13)
}
 0x26c   : > { %s853_s26 = smov 128   ;;  %s854_s27 = smov 8  }
 0x26d   : > { %645 = dma.vmem_to_hbm [thread:$0]  (%p1180_p1), %s1123_s7, 256, %s1121_s3, %s511_s13, %s853_s26, %s853_s26, %s854_s27  }
 0x26e PF: > { %s539_s23 = sand.u32 1, %s824_s9   ;;  %p1181_p12 = scmp.ne.s32.totalorder %s1176_s22, 0 }
 0x26f   : > { %p1182_p7 = scmp.ge.s32.totalorder %s836_s12, 2  ;;  %s540_s25 = scalar_lea.sflag [#allocation6], %s539_s23 }
 0x271   : > { %p655_p10 = pnand %p1182_p7, %p1181_p12 }
 0x273   : > { %p656_p0 = pneg %p655_p10 }
 0x275   : > { %819 = dma.done.wait (%p656_p0), %s540_s25, 256  }
 0x276   : > { %821 = vsyncadd (%p656_p0), %s540_s25, 4294967040  ;;  %p18_p2 = scmp.ge.s32.totalorder %s895_s15, 4   ;;  %s1183_s9 = smov %s828_s10 }
 0x277   : > { %s1184_s10 = smov %s832_s11  ;;  %s1185_s11 = smov %s907_s18 }
 0x278   : > { %s1186_s12 = smov %s895_s15  ;;  %20 = sbr.rel (!%p18_p2) target bundleno = 7 (0x7), region = 86 }
 0x27d   :  { %545 = vsyncpa [#allocation5], 1 }
 0x27e   :  { %547 = vsyncpa [#allocation5 + $0x1], 1 }
 0x27f   :  { %548 = vsyncpa [#allocation8], 1 }
 0x280   :  { %550 = vsyncpa [#allocation8 + $0x1], 1 }
 0x281   :  { %551 = vsyncpa [#allocation6], 1 }
 0x282   :  { %553 = vsyncpa [#allocation6 + $0x1], 1 }

</bundles_post_ra>
